<compile_context>
chip_gen: v5e
topology: v5e:2x2
jax: 0.10.0
libtpu: 0.0.40
codegen_flags: <defaults>
</compile_context>

<pallas_src>
import jax
import jax.numpy as jnp
from jax import lax
from jax.experimental import pallas as pl
from jax.experimental.pallas import tpu as pltpu


# ---------------------------------------------------------------------------
# Fused var_enc kernel: Linear(H,H)+bias -> ReLU -> Linear(H,H,no bias) -> LayerNorm
# ---------------------------------------------------------------------------
def _var_enc_kernel(x_ref, w1_ref, b1_ref, w2_ref, gamma_ref, beta_ref, o_ref):
    """One row-tile of the var_enc MLP.

    x_ref     : [tile_n, H]  f32 aggregated variable features
    w1_ref    : [H, H]       bf16, first Linear weight, pre-transposed (in, out)
    b1_ref    : [1, H]       f32, first Linear bias
    w2_ref    : [H, H]       bf16, second Linear weight, pre-transposed (in, out)
    gamma_ref : [1, H]       f32, LayerNorm scale
    beta_ref  : [1, H]       f32, LayerNorm shift
    o_ref     : [tile_n, H]  output
    """
    x = x_ref[...].astype(jnp.float32)

    # Linear 1 + bias + ReLU. bf16 MXU operands, f32 accumulation; VPU math in f32.
    h = jnp.dot(x.astype(jnp.bfloat16), w1_ref[...],
                preferred_element_type=jnp.float32)
    h = jnp.maximum(h + b1_ref[...], 0.0)

    # Linear 2 (no bias).
    z = jnp.dot(h.astype(jnp.bfloat16), w2_ref[...],
                preferred_element_type=jnp.float32)

    # LayerNorm over the feature (lane) axis, eps = 1e-5 (torch default).
    mean = jnp.mean(z, axis=-1, keepdims=True)
    c = z - mean
    var = jnp.mean(c * c, axis=-1, keepdims=True)
    zn = c * lax.rsqrt(var + 1e-5)
    o_ref[...] = (zn * gamma_ref[...] + beta_ref[...]).astype(o_ref.dtype)


def _choose_tile_n(n_rows, hidden_dim):
    """Largest multiple-of-8 row tile that fits a conservative VMEM budget.

    Budget is kept well under the default scoped VMEM limit on every generation
    (16 MiB v5e / 32 MiB v6e / 32-of-64 MiB v7x) so the same code never OOMs.
    """
    budget = 12 * 1024 * 1024
    # Resident (constant index_map) operands, double-buffered by default:
    resident = 2 * (2 * hidden_dim * hidden_dim * 2 + 3 * hidden_dim * 4)
    # Per row: x tile + out tile, f32, double-buffered.
    per_row = 2 * 2 * hidden_dim * 4
    cap = max(8, (budget - resident) // max(per_row, 1))
    tile = min(n_rows, 512, cap)
    return max(8, (tile // 8) * 8)


def var_enc_forward(z_var, params):
    """Applies the fused var_enc MLP to z_var: [num_var, H] -> [num_var, H]."""
    n, hidden_dim = z_var.shape
    tile_n = _choose_tile_n(max(n, 8), hidden_dim)
    n_pad = ((n + tile_n - 1) // tile_n) * tile_n
    x = jnp.pad(z_var, ((0, n_pad - n), (0, 0))) if n_pad != n else z_var

    # Pre-transpose weights to (in, out) and downcast to bf16 for the MXU.
    w1_t = params["w1"].T.astype(jnp.bfloat16)
    w2_t = params["w2"].T.astype(jnp.bfloat16)
    b1 = params["b1"].reshape(1, hidden_dim).astype(jnp.float32)
    gamma = params["gamma"].reshape(1, hidden_dim).astype(jnp.float32)
    beta = params["beta"].reshape(1, hidden_dim).astype(jnp.float32)

    cost = pl.CostEstimate(
        flops=int(4 * n_pad * hidden_dim * hidden_dim + 10 * n_pad * hidden_dim),
        transcendentals=int(n_pad),
        bytes_accessed=int(2 * n_pad * hidden_dim * 4
                           + 2 * hidden_dim * hidden_dim * 2
                           + 3 * hidden_dim * 4),
    )

    out = pl.pallas_call(
        _var_enc_kernel,
        out_shape=jax.ShapeDtypeStruct((n_pad, hidden_dim), z_var.dtype),
        grid_spec=pltpu.PrefetchScalarGridSpec(
            num_scalar_prefetch=0,
            grid=(n_pad // tile_n,),
            in_specs=[
                pl.BlockSpec((tile_n, hidden_dim), lambda i: (i, 0)),   # x tile
                pl.BlockSpec((hidden_dim, hidden_dim), lambda i: (0, 0)),  # w1^T (bf16)
                pl.BlockSpec((1, hidden_dim), lambda i: (0, 0)),        # b1
                pl.BlockSpec((hidden_dim, hidden_dim), lambda i: (0, 0)),  # w2^T (bf16)
                pl.BlockSpec((1, hidden_dim), lambda i: (0, 0)),        # gamma
                pl.BlockSpec((1, hidden_dim), lambda i: (0, 0)),        # beta
            ],
            out_specs=pl.BlockSpec((tile_n, hidden_dim), lambda i: (i, 0)),
        ),
        compiler_params=pltpu.CompilerParams(
            dimension_semantics=("parallel",),
        ),
        cost_estimate=cost,
    )(x, w1_t, b1, w2_t, gamma, beta)
    return out[:n]


# ---------------------------------------------------------------------------
# Full Val2Val_Layer forward
# ---------------------------------------------------------------------------
def val2val_forward(y_val, var_idx, num_var, params, aggr="mean"):
    """y_val: [num_val, H], var_idx: [num_val] int32 -> updated y_val [num_val, H]."""
    assert aggr in ("sum", "mean", "max")
    y32 = y_val.astype(jnp.float32)

    # TODO(synk): the data-dependent scatter (sum/mean/max over var_idx) and the final
    # gather have no clean rectangular-tile Pallas equivalent; they use XLA segment ops.
    if aggr == "max":
        z_var = jax.ops.segment_max(y32, var_idx, num_segments=num_var)
        cnt = jax.ops.segment_sum(jnp.ones((y32.shape[0], 1), jnp.float32),
                                  var_idx, num_segments=num_var)
        z_var = jnp.where(cnt > 0, z_var, 0.0)  # empty segments -> 0
    else:
        z_var = jax.ops.segment_sum(y32, var_idx, num_segments=num_var)
        if aggr == "mean":
            cnt = jax.ops.segment_sum(jnp.ones((y32.shape[0], 1), jnp.float32),
                                      var_idx, num_segments=num_var)
            z_var = z_var / jnp.maximum(cnt, 1.0)

    z_enc = var_enc_forward(z_var.astype(y_val.dtype), params)

    # y_val += z_var[var_idx]
    return y_val + z_enc[var_idx]


def init_params(key, hidden_dim, dtype=jnp.float32):
    """Synthetic params matching the torch module's shapes / init ranges."""
    k1, k2, k3 = jax.random.split(key, 3)
    bound = 1.0 / (hidden_dim ** 0.5)
    return {
        "w1": jax.random.uniform(k1, (hidden_dim, hidden_dim), dtype, -bound, bound),
        "b1": jax.random.uniform(k2, (hidden_dim,), dtype, -bound, bound),
        "w2": jax.random.uniform(k3, (hidden_dim, hidden_dim), dtype, -bound, bound),
        "gamma": jnp.ones((hidden_dim,), dtype),
        "beta": jnp.zeros((hidden_dim,), dtype),
    }


def _reference(y_val, var_idx, num_var, params, aggr):
    """Pure-JAX reference (bf16 matmul operands to match kernel numerics)."""
    y32 = y_val.astype(jnp.float32)
    if aggr == "max":
        z = jax.ops.segment_max(y32, var_idx, num_segments=num_var)
        cnt = jax.ops.segment_sum(jnp.ones((y32.shape[0], 1), jnp.float32),
                                  var_idx, num_segments=num_var)
        z = jnp.where(cnt > 0, z, 0.0)
    else:
        z = jax.ops.segment_sum(y32, var_idx, num_segments=num_var)
        if aggr == "mean":
            cnt = jax.ops.segment_sum(jnp.ones((y32.shape[0], 1), jnp.float32),
                                      var_idx, num_segments=num_var)
            z = z / jnp.maximum(cnt, 1.0)
    h = jnp.dot(z.astype(jnp.bfloat16), params["w1"].T.astype(jnp.bfloat16),
                preferred_element_type=jnp.float32)
    h = jnp.maximum(h + params["b1"], 0.0)
    z2 = jnp.dot(h.astype(jnp.bfloat16), params["w2"].T.astype(jnp.bfloat16),
                 preferred_element_type=jnp.float32)
    mean = jnp.mean(z2, axis=-1, keepdims=True)
    var = jnp.mean((z2 - mean) ** 2, axis=-1, keepdims=True)
    zn = (z2 - mean) / jnp.sqrt(var + 1e-5)
    zn = zn * params["gamma"] + params["beta"]
    return y_val + zn[var_idx]


if __name__ == "__main__":
    key = jax.random.PRNGKey(0)
    kp, kx, ki = jax.random.split(key, 3)

    hidden_dim = 32
    num_val = 16     # value nodes (rows of y_val)
    num_var = 6      # variable nodes

    params = init_params(kp, hidden_dim)
    y_val = jax.random.normal(kx, (num_val, hidden_dim), jnp.float32)
    var_idx = jax.random.randint(ki, (num_val,), 0, num_var, dtype=jnp.int32)
    # make sure every variable has at least one value node
    var_idx = var_idx.at[:num_var].set(jnp.arange(num_var, dtype=jnp.int32))

    for aggr in ("sum", "mean", "max"):
        out = val2val_forward(y_val, var_idx, num_var, params, aggr=aggr)
        out = jax.block_until_ready(out)
        ref = _reference(y_val, var_idx, num_var, params, aggr)
        assert out.shape == (num_val, hidden_dim), out.shape
        err = float(jnp.max(jnp.abs(out - ref)))
        assert err < 5e-3, (aggr, err)

    print("KERNEL_OK")
</pallas_src>

<mosaic_0001>
module attributes {stable_mosaic.version = 11 : i64} {
  func.func @_var_enc_kernel(%arg0: i32, %arg1: memref<8x32xf32, #tpu.memory_space<vmem>>, %arg2: memref<32x32xbf16, #tpu.memory_space<vmem>>, %arg3: memref<1x32xf32, #tpu.memory_space<vmem>>, %arg4: memref<32x32xbf16, #tpu.memory_space<vmem>>, %arg5: memref<1x32xf32, #tpu.memory_space<vmem>>, %arg6: memref<1x32xf32, #tpu.memory_space<vmem>>, %arg7: memref<8x32xf32, #tpu.memory_space<vmem>>) attributes {dimension_semantics = [#tpu.dimension_semantics<parallel>], iteration_bounds = array<i64: 1>, scalar_prefetch = 0 : i64, scratch_operands = 0 : i64, tpu.core_type = #tpu.core_type<tc>, window_params = [{transform_indices = @transform_0, window_bounds = array<i64: 8, 32>}, {pipeline_mode = #tpu.pipeline_mode<synchronous>, transform_indices = @transform_1, window_bounds = array<i64: 32, 32>}, {pipeline_mode = #tpu.pipeline_mode<synchronous>, transform_indices = @transform_2, window_bounds = array<i64: 1, 32>}, {pipeline_mode = #tpu.pipeline_mode<synchronous>, transform_indices = @transform_3, window_bounds = array<i64: 32, 32>}, {pipeline_mode = #tpu.pipeline_mode<synchronous>, transform_indices = @transform_4, window_bounds = array<i64: 1, 32>}, {pipeline_mode = #tpu.pipeline_mode<synchronous>, transform_indices = @transform_5, window_bounds = array<i64: 1, 32>}, {transform_indices = @transform_6, window_bounds = array<i64: 8, 32>}]} {
    %c0 = arith.constant 0 : index
    %c0_0 = arith.constant 0 : index
    %0 = vector.load %arg1[%c0, %c0_0] : memref<8x32xf32, #tpu.memory_space<vmem>>, vector<8x32xf32>
    %1 = arith.truncf %0 : vector<8x32xf32> to vector<8x32xbf16>
    %c0_1 = arith.constant 0 : index
    %c0_2 = arith.constant 0 : index
    %2 = vector.load %arg2[%c0_1, %c0_2] : memref<32x32xbf16, #tpu.memory_space<vmem>>, vector<32x32xbf16>
    %cst = arith.constant dense<0.000000e+00> : vector<8x32xf32>
    %3 = tpu.matmul %1, %2, %cst {dimension_numbers = #tpu.dot_dimension_numbers<[1], [0], [0], [1], [0, 0, 1, 1], [], []>} : vector<8x32xbf16>, vector<32x32xbf16>, vector<8x32xf32> -> vector<8x32xf32>
    %c0_3 = arith.constant 0 : index
    %c0_4 = arith.constant 0 : index
    %4 = vector.load %arg3[%c0_3, %c0_4] : memref<1x32xf32, #tpu.memory_space<vmem>>, vector<1x32xf32>
    %5 = vector.broadcast %4 : vector<1x32xf32> to vector<8x32xf32>
    %6 = arith.addf %3, %5 : vector<8x32xf32>
    %cst_5 = arith.constant 0.000000e+00 : f32
    %7 = vector.broadcast %cst_5 : f32 to vector<8x32xf32>
    %8 = arith.maximumf %6, %7 : vector<8x32xf32>
    %9 = arith.truncf %8 : vector<8x32xf32> to vector<8x32xbf16>
    %c0_6 = arith.constant 0 : index
    %c0_7 = arith.constant 0 : index
    %10 = vector.load %arg4[%c0_6, %c0_7] : memref<32x32xbf16, #tpu.memory_space<vmem>>, vector<32x32xbf16>
    %cst_8 = arith.constant dense<0.000000e+00> : vector<8x32xf32>
    %11 = tpu.matmul %9, %10, %cst_8 {dimension_numbers = #tpu.dot_dimension_numbers<[1], [0], [0], [1], [0, 0, 1, 1], [], []>} : vector<8x32xbf16>, vector<32x32xbf16>, vector<8x32xf32> -> vector<8x32xf32>
    %cst_9 = arith.constant dense<0.000000e+00> : vector<8xf32>
    %12 = vector.multi_reduction <add>, %11, %cst_9 [1] : vector<8x32xf32> to vector<8xf32>
    %13 = vector.shape_cast %12 : vector<8xf32> to vector<8x1xf32>
    %cst_10 = arith.constant 3.200000e+01 : f32
    %14 = vector.broadcast %cst_10 : f32 to vector<8x1xf32>
    %15 = arith.divf %13, %14 : vector<8x1xf32>
    %16 = vector.broadcast %15 : vector<8x1xf32> to vector<8x32xf32>
    %17 = arith.subf %11, %16 : vector<8x32xf32>
    %18 = arith.mulf %17, %17 : vector<8x32xf32>
    %cst_11 = arith.constant dense<0.000000e+00> : vector<8xf32>
    %19 = vector.multi_reduction <add>, %18, %cst_11 [1] : vector<8x32xf32> to vector<8xf32>
    %20 = vector.shape_cast %19 : vector<8xf32> to vector<8x1xf32>
    %cst_12 = arith.constant 3.200000e+01 : f32
    %21 = vector.broadcast %cst_12 : f32 to vector<8x1xf32>
    %22 = arith.divf %20, %21 : vector<8x1xf32>
    %cst_13 = arith.constant 9.99999974E-6 : f32
    %23 = vector.broadcast %cst_13 : f32 to vector<8x1xf32>
    %24 = arith.addf %22, %23 : vector<8x1xf32>
    %25 = math.rsqrt %24 : vector<8x1xf32>
    %26 = vector.broadcast %25 : vector<8x1xf32> to vector<8x32xf32>
    %27 = arith.mulf %17, %26 : vector<8x32xf32>
    %c0_14 = arith.constant 0 : index
    %c0_15 = arith.constant 0 : index
    %28 = vector.load %arg5[%c0_14, %c0_15] : memref<1x32xf32, #tpu.memory_space<vmem>>, vector<1x32xf32>
    %29 = vector.broadcast %28 : vector<1x32xf32> to vector<8x32xf32>
    %30 = arith.mulf %27, %29 : vector<8x32xf32>
    %c0_16 = arith.constant 0 : index
    %c0_17 = arith.constant 0 : index
    %31 = vector.load %arg6[%c0_16, %c0_17] : memref<1x32xf32, #tpu.memory_space<vmem>>, vector<1x32xf32>
    %32 = vector.broadcast %31 : vector<1x32xf32> to vector<8x32xf32>
    %33 = arith.addf %30, %32 : vector<8x32xf32>
    %c0_18 = arith.constant 0 : index
    %c0_19 = arith.constant 0 : index
    %34 = vector.load %arg7[%c0_18, %c0_19] : memref<8x32xf32, #tpu.memory_space<vmem>>, vector<8x32xf32>
    tpu.vector_store %arg7[%c0_18, %c0_19], %33 {strides = array<i32>} : memref<8x32xf32, #tpu.memory_space<vmem>>, vector<8x32xf32>,
    return
  }
  func.func @transform_0(%arg0: i32) -> (i32, i32) {
    %c0_i32 = arith.constant 0 : i32
    %c0_i32_0 = arith.constant 0 : i32
    return %arg0, %c0_i32 : i32, i32
  }
  func.func @transform_1(%arg0: i32) -> (i32, i32) {
    %c0_i32 = arith.constant 0 : i32
    %c0_i32_0 = arith.constant 0 : i32
    %c0_i32_1 = arith.constant 0 : i32
    return %c0_i32, %c0_i32_0 : i32, i32
  }
  func.func @transform_2(%arg0: i32) -> (i32, i32) {
    %c0_i32 = arith.constant 0 : i32
    %c0_i32_0 = arith.constant 0 : i32
    %c0_i32_1 = arith.constant 0 : i32
    return %c0_i32, %c0_i32_0 : i32, i32
  }
  func.func @transform_3(%arg0: i32) -> (i32, i32) {
    %c0_i32 = arith.constant 0 : i32
    %c0_i32_0 = arith.constant 0 : i32
    %c0_i32_1 = arith.constant 0 : i32
    return %c0_i32, %c0_i32_0 : i32, i32
  }
  func.func @transform_4(%arg0: i32) -> (i32, i32) {
    %c0_i32 = arith.constant 0 : i32
    %c0_i32_0 = arith.constant 0 : i32
    %c0_i32_1 = arith.constant 0 : i32
    return %c0_i32, %c0_i32_0 : i32, i32
  }
  func.func @transform_5(%arg0: i32) -> (i32, i32) {
    %c0_i32 = arith.constant 0 : i32
    %c0_i32_0 = arith.constant 0 : i32
    %c0_i32_1 = arith.constant 0 : i32
    return %c0_i32, %c0_i32_0 : i32, i32
  }
  func.func @transform_6(%arg0: i32) -> (i32, i32) {
    %c0_i32 = arith.constant 0 : i32
    %c0_i32_0 = arith.constant 0 : i32
    return %arg0, %c0_i32 : i32, i32
  }
}

</mosaic_0001>

<bundles_post_ra>
// kernel: tpu_custom_call.1
= control target key start
LH: loop header
LB: loop body
LE: loop exit
PB: predicated region body
PF: predicated region fallthrough
CT: control target
= control target key end

     0   :  { %11 = vsyncpa [#allocation3], 0  ;;  %s407_s0 = inlined_call_operand.hbm [shape: f32[8,32], index: 0, kind: input, shape index: {}]   ;;  %s408_s1 = inlined_call_operand.hbm [shape: bf16[32,32], index: 1, kind: input, shape index: {}]   ;;  %s409_s2 = inlined_call_operand.vmem [shape: f32[1,32], index: 2, kind: input, shape index: {}]   ;;  %s410_s3 = inlined_call_operand.hbm [shape: bf16[32,32], index: 3, kind: input, shape index: {}]   ;;  %s411_s4 = inlined_call_operand.vmem [shape: f32[1,32], index: 4, kind: input, shape index: {}]   ;;  %s412_s5 = inlined_call_operand.vmem [shape: f32[1,32], index: 5, kind: input, shape index: {}]   ;;  %s413_s6 = inlined_call_operand.hbm [shape: f32[8,32], index: 6, kind: output, shape index: {}]  }
   0x1   :  { %12 = vsyncpa [#allocation6], 0  ;;  %s29_s23 = sshll.u32 %s408_s1, 4  ;;  %s30_s23 = int_to_ptr.hbm [resolvable:$true] %s29_s23 }
   0x2   :  { %13 = vsyncpa [#allocation4], 0  ;;  %s339_s24 = smov [#allocation5]   ;;  %s19_s28 = sshll.u32 %s407_s0, 4  ;;  %s20_s28 = int_to_ptr.hbm [resolvable:$true] %s19_s28 }
   0x3   :  { %s31_s25 = sshll.u32 %s339_s24, 4  ;;  %s340_s29 = smov 64   ;;  %s32_s25 = int_to_ptr.vmem [resolvable:$true] %s31_s25 }
   0x4   :  { %s341_s30 = smov 4   ;;  %s342_s7 = smov [#allocation2]  }
   0x5   :  { %37 = dma.hbm_to_vmem [thread:$0]  %s30_s23, 256, %s32_s25, [#allocation6], %s340_s29, %s340_s29, %s341_s30  }
   0x6   :  { %s21_s8 = sshll.u32 %s342_s7, 4  ;;  %s44_s11 = sshll.u32 %s410_s3, 4  ;;  %s22_s8 = int_to_ptr.vmem [resolvable:$true] %s21_s8  ;;  %s45_s11 = int_to_ptr.hbm [resolvable:$true] %s44_s11 }
   0x7   :  { %24 = dma.hbm_to_vmem [thread:$0]  %s20_s28, 128, %s22_s8, [#allocation3]  }
   0x8   :  { %s343_s1 = smov [#allocation7]  }
   0x9   :  { %s46_s12 = sshll.u32 %s343_s1, 4  ;;  %s47_s12 = int_to_ptr.vmem [resolvable:$true] %s46_s12 }
   0xa   :  { %52 = dma.hbm_to_vmem [thread:$0]  %s45_s11, 256, %s47_s12, [#allocation6], %s340_s29, %s340_s29, %s341_s30  }
   0xb   :  { %333 = dma.done.wait [#allocation3], 128  }
   0xc   :  { %334 = vsyncadd [#allocation3], 4294967168 }
   0xd   :  { %335 = dma.done.wait [#allocation6], 512  }
   0xe   :  { %336 = vsyncadd [#allocation6], 4294966784  ;;  %v220_v0 = vld [vmem:[#allocation5 + $0x8] sm:$0xff]  ;;  %v219_v1 = vld [vmem:[#allocation5] sm:$0xff]  ;;  %vm92_vm0 = vcmask 261120   ;;  %v344_v15 = vmov 32.0  }
   0xf   :  { %102 = vmatpush.bf16.msra.mxu0 %v220_v0  ;;  %v70_v2 = vld [vmem:[#allocation2] sm:$0xff]  ;;  %v221_v5 = vld [vmem:[#allocation7] sm:$0xff]  ;;  %233 = vrcp.f32 %v344_v15  ;;  %s345_s16 = smov [#allocation8]   ;;  %s190_s20 = sshll.u32 %s413_s6, 4  ;;  %s191_s20 = int_to_ptr.hbm [resolvable:$true] %s190_s20 }
  0x10   :  { %v71_v3 = vpack.c.bf16 %v70_v2, %v70_v2  ;;  %v222_v4 = vld [vmem:[#allocation7 + $0x8] sm:$0xff]  ;;  %s188_s17 = sshll.u32 %s345_s16, 4  ;;  %s189_s17 = int_to_ptr.vmem [resolvable:$true] %s188_s17 }
  0x11   :  { %136 = vmatpush.bf16.msra.mxu1 %v222_v4  ;;  %v230_v6 = vld [vmem:[%s409_s2] ss:$0 sm:$0xff] }
  0x12   :  { %v231_v36 = vld [vmem:[%s411_s4] ss:$0 sm:$0xff] }
  0x13   :  { %103 = vmatpush.bf16.msra.mxu0 %v219_v1  ;;  %v232_v39 = vld [vmem:[%s412_s5] ss:$0 sm:$0xff] }
  0x15   :  { %137 = vmatpush.bf16.msra.mxu1 %v221_v5  ;;  %v234_v16 = vpop.eup %233 }
  0x16   :  { %209 = vmatmul.msk.bf16.vlgmr.msra.gmra.mxu0 %vm92_vm0, %v71_v3  ;;  %v147_v17 = vmul.f32 32.0, %v234_v16  ;;  %vm151_vm1 = vweird.f32 %v234_v16 }
  0x18   :  { %v148_v18 = vsub.f32 1.0, %v147_v17 }
  0x1a   :  { %v149_v19 = vmul.f32 %v234_v16, %v148_v18 }
  0x1c   :  { %v150_v20 = vadd.f32 %v234_v16, %v149_v19 }
  0x1e   :  { %v152_v21 = vsel %vm151_vm1, %v234_v16, %v150_v20 }
  0x93   :  { %v105_v7 = vpop.f32.mrf.mxu0 }
  0x94   :  { %v106_v8 = vadd.f32 %v230_v6, %v105_v7 }
  0x96   :  { %v109_v9 = vmax.f32 %v106_v8, 0.0 }
  0x98   :  { %v110_v10 = vpack.c.bf16 %v109_v9, %v109_v9 }
  0x9a   :  { %218 = vmatmul.msk.bf16.vlgmr.msra.gmra.mxu1 %vm92_vm0, %v110_v10 }
  0x9b   :  { %v107_v11 = vpop.f32.mrf.mxu0 }
 0x117   :  { %v139_v12 = vpop.f32.mrf.mxu1 }
 0x118   :  { %v143_v13 = vsel %vm92_vm0, %v139_v12, 0.0 }
 0x119   :  { %144 = vadd.xlane.f32.xlu0 %v143_v13 }
 0x11f   :  { %v141_v14 = vpop.f32.mrf.mxu1 }
 0x18c   :  { %v145_v22 = vpop.xlane.xlu0 %144 }
 0x18d   :  { %v153_v23 = vmul.f32 %v152_v21, %v145_v22 }
 0x18f   :  { %v154_v24 = vsub.f32 %v139_v12, %v153_v23 }
 0x191   :  { %v155_v25 = vmul.f32 %v154_v24, %v154_v24 }
 0x193   :  { %v156_v26 = vsel %vm92_vm0, %v155_v25, 0.0 }
 0x194   :  { %157 = vadd.xlane.f32.xlu0 %v156_v26 }
 0x207   :  { %v158_v27 = vpop.xlane.xlu0 %157 }
 0x208   :  { %v159_v28 = vmul.f32 %v158_v27, %v152_v21 }
 0x20a   :  { %v160_v29 = vadd.f32 1e-05, %v159_v28 }
 0x20c   :  { %235 = vrsqrt.f32 %v160_v29  ;;  %vm167_vm3 = vweird.f32 %v160_v29 }
 0x212   :  { %v236_v30 = vpop.eup %235 }
 0x213   :  { %v162_v31 = vmul.f32 %v236_v30, %v160_v29  ;;  %vm168_vm2 = vweird.f32 %v236_v30 }
 0x214   :  { %vm169_vm4 = vmor %vm167_vm3, %vm168_vm2 }
 0x215   :  { %v163_v32 = vmul.f32 %v236_v30, %v162_v31 }
 0x217   :  { %v164_v33 = vmul.f32 0.5, %v163_v32 }
 0x219   :  { %v165_v34 = vsub.f32 1.5, %v164_v33 }
 0x21b   :  { %v166_v35 = vmul.f32 %v236_v30, %v165_v34 }
 0x21d   :  { %v170_v37 = vsel %vm169_vm4, %v236_v30, %v166_v35 }
 0x21e   :  { %v171_v38 = vmul.f32 %v170_v37, %v154_v24 }
 0x220   :  { %v176_v40 = vmul.f32 %v231_v36, %v171_v38 }
 0x222   :  { %v181_v41 = vadd.f32 %v232_v39, %v176_v40 }
 0x224   :  { %182 = vst.msk [vmem:[#allocation8] sm:$0xff] %vm92_vm0, %v181_v41 }
 0x225   :  { %193 = dma.vmem_to_hbm [thread:$0]  %s189_s17, 128, %s191_s20, [#allocation4]  }
 0x226   :  { %337 = dma.done.wait [#allocation4], 128  }
 0x227   :  { %338 = vsyncadd [#allocation4], 4294967168 }
 0x228   :  { %198 = vsyncpa [#allocation3], 1 }
 0x229   :  { %199 = vsyncpa [#allocation6], 1 }
 0x22a   :  { %200 = vsyncpa [#allocation4], 1 }

</bundles_post_ra>
